<compile_context>
chip_gen: v6e
topology: v6e:2x2x1
jax: 0.10.0
libtpu: 0.0.40
codegen_flags: <defaults>
</compile_context>

<pallas_src>
import functools

import jax
import jax.numpy as jnp
from jax import lax
from jax.experimental import pallas as pl
from jax.experimental.pallas import tpu as pltpu


# ---------------------------- fused kernel ----------------------------

def _ram_fused_kernel(x_ref, w_ref, shift_ref, o_ref, *, L, CP, K):
    """Entire RAM forward for one batch row, fully fused on-chip.

    x_ref:     (1, CP, L)        channel-padded input row
    w_ref:     (S, CP, K*CP)     per-stage folded conv weights (BN scale folded in)
    shift_ref: (S, CP, 1)        per-stage folded BN shift
    o_ref:     (1, CP, L)        output row
    """
    p = K // 2
    col = lax.broadcasted_iota(jnp.int32, (CP, L), 1)

    def shifted(a, off):
        # b[:, l] = a[:, l + off], zero outside [0, L)  (same-padding halo).
        if off == 0:
            return a
        r = pltpu.roll(a, shift=(-off) % L, axis=1)
        if off > 0:
            return jnp.where(col < L - off, r, 0.0)
        return jnp.where(col >= -off, r, 0.0)

    def stage(a, s, *, tanh=False, res=None, res_op=None):
        # im2col-style stacked activation: row block j holds the input shifted
        # for conv tap j.  One (CP, K*CP) @ (K*CP, L) MXU matmul per stage.
        a_stack = jnp.concatenate(
            [shifted(a, j - p) for j in range(K)], axis=0)          # (K*CP, L)
        y = jnp.dot(w_ref[s], a_stack, preferred_element_type=jnp.float32)
        y = y + shift_ref[s]                                        # folded BN shift
        if res_op == "add":
            y = y + res
        elif res_op == "mul":
            y = y * res
        if tanh:
            y = jnp.tanh(y)
        return y

    x = x_ref[0].astype(jnp.float32)                                # (CP, L)
    h = stage(x, 0, tanh=True)          # down1: conv+bn+tanh
    d1 = stage(h, 1)                    #        conv+bn            -> D1
    h = stage(d1, 2, tanh=True)         # down2
    d2 = stage(h, 3)                    #                           -> D2
    h = stage(d2, 4, tanh=True)         # lateral
    lat = stage(h, 5)                   #                           -> L
    h = stage(lat, 6, tanh=True)        # up1 (convT as conv)
    u1 = stage(h, 7, res=d1, res_op="add")          # up1(L) + D1   -> U1
    h = stage(u1, 8, tanh=True)         # up2
    u2 = stage(h, 9, res=x, res_op="mul", tanh=True)  # tanh(up2(U1) * x)
    o_ref[0] = u2.astype(o_ref.dtype)   # dropout (inference) == identity


# ------------------------- host-side wrapper --------------------------

def _round_up(n, m):
    return ((n + m - 1) // m) * m


def _fold_stage(w, scale, shift, CP):
    """w: (Cout, Cin, K) regular-conv weight.  Fold BN scale into the weight and
    lay it out as (CP, K*CP) im2col weight; shift -> (CP, 1)."""
    cout, cin, K = w.shape
    wf = w * scale[:, None, None]                       # fold BN scale
    wf = jnp.transpose(wf, (0, 2, 1))                   # (Cout, K, Cin)
    wf = jnp.pad(wf, ((0, CP - cout), (0, 0), (0, CP - cin)))
    wf = wf.reshape(CP, K * CP)
    sh = jnp.pad(shift, (0, CP - cout)).reshape(CP, 1)
    return wf.astype(jnp.float32), sh.astype(jnp.float32)


def _fold_and_stack(stages, c1):
    K = stages[0][0].shape[2]
    max_c = max(max(w.shape[0], w.shape[1]) for w, _, _ in stages)
    CP = _round_up(max(max_c, c1), 8)                   # pad channels to 8 sublanes
    ws, shs = [], []
    for w, scale, shift in stages:
        wf, sh = _fold_stage(w, scale, shift, CP)
        ws.append(wf)
        shs.append(sh)
    return jnp.stack(ws), jnp.stack(shs), CP, K


def ram_forward(x, stages):
    """x: (N, C1, L) f32.  stages: list of (conv_w, bn_scale, bn_shift) in forward
    order (ConvTranspose stages already rewritten as regular convs)."""
    N, C1, L = x.shape
    w_stack, shift_stack, CP, K = _fold_and_stack(stages, C1)
    S = w_stack.shape[0]
    assert K % 2 == 1, "only odd kernel sizes (same padding) supported"

    xp = x if C1 == CP else jnp.pad(x, ((0, 0), (0, CP - C1), (0, 0)))

    kernel = functools.partial(_ram_fused_kernel, L=L, CP=CP, K=K)
    out = pl.pallas_call(
        kernel,
        out_shape=jax.ShapeDtypeStruct((N, CP, L), jnp.float32),
        grid_spec=pltpu.PrefetchScalarGridSpec(
            num_scalar_prefetch=0,
            grid=(N,),
            in_specs=[
                pl.BlockSpec((1, CP, L), lambda n: (n, 0, 0)),
                pl.BlockSpec((S, CP, K * CP), lambda n: (0, 0, 0)),
                pl.BlockSpec((S, CP, 1), lambda n: (0, 0, 0)),
            ],
            out_specs=pl.BlockSpec((1, CP, L), lambda n: (n, 0, 0)),
        ),
        compiler_params=pltpu.CompilerParams(
            dimension_semantics=("parallel",)),   # 2 TCs on v7x; serial loop elsewhere
    )(xp, w_stack, shift_stack)
    return out if C1 == CP else out[:, :C1, :]


# ---------------- deterministic parameter construction ----------------

def _conv_w(key, cout, cin, k):
    return 0.1 * jax.random.normal(key, (cout, cin, k), jnp.float32)


def _convT_w(key, cout, cin, k):
    # PyTorch ConvTranspose1d(cin, cout) weight layout is (Cin, Cout, K).
    wT = 0.1 * jax.random.normal(key, (cin, cout, k), jnp.float32)
    # stride=1, pad=k//2 transposed conv == regular same-padded conv with the
    # channel axes swapped and the taps flipped.
    return jnp.flip(jnp.transpose(wT, (1, 0, 2)), axis=2)


def _bn(key, c, eps=1e-5):
    k1, k2, k3, k4 = jax.random.split(key, 4)
    gamma = 1.0 + 0.1 * jax.random.normal(k1, (c,), jnp.float32)
    beta = 0.1 * jax.random.normal(k2, (c,), jnp.float32)
    mean = 0.1 * jax.random.normal(k3, (c,), jnp.float32)
    var = 1.0 + 0.1 * jax.random.uniform(k4, (c,), jnp.float32)
    scale = gamma / jnp.sqrt(var + eps)
    shift = beta - mean * scale
    return scale, shift


def init_params(key, c1, c2, c3, k):
    """Returns the 10 (conv_weight, bn_scale, bn_shift) stages in forward order."""
    ks = jax.random.split(key, 20)
    plan = [
        (_conv_w,  c2, c1), (_conv_w,  c2, c2),   # down1
        (_conv_w,  c3, c2), (_conv_w,  c3, c3),   # down2
        (_conv_w,  c3, c3), (_conv_w,  c3, c3),   # lateral
        (_convT_w, c2, c3), (_convT_w, c2, c2),   # up1 (ConvTranspose1d)
        (_convT_w, c1, c2), (_convT_w, c1, c1),   # up2 (ConvTranspose1d)
    ]
    stages = []
    for i, (mk, cout, cin) in enumerate(plan):
        w = mk(ks[2 * i], cout, cin, k)
        scale, shift = _bn(ks[2 * i + 1], cout)
        stages.append((w, scale, shift))
    return stages


if __name__ == "__main__":
    key = jax.random.PRNGKey(0)
    kx, kp = jax.random.split(key)

    N, C1, L, K = 2, 16, 128, 3       # input_size=16 -> chans 16/8/4, kernel_size=3, stride=1
    C2, C3 = C1 // 2, C1 // 4
    stages = init_params(kp, C1, C2, C3, K)

    x = jax.random.normal(kx, (N, C1, L), jnp.float32)
    out = ram_forward(x, stages)
    out = jax.block_until_ready(out)
    assert out.shape == (N, C1, L) and out.dtype == jnp.float32
    print("KERNEL_OK")
</pallas_src>

<mosaic_0001>
module attributes {stable_mosaic.version = 11 : i64} {
  func.func @_ram_fused_kernel(%arg0: i32, %arg1: memref<1x16x128xf32, #tpu.memory_space<vmem>>, %arg2: memref<10x16x48xf32, #tpu.memory_space<vmem>>, %arg3: memref<10x16x1xf32, #tpu.memory_space<vmem>>, %arg4: memref<1x16x128xf32, #tpu.memory_space<vmem>>) attributes {dimension_semantics = [#tpu.dimension_semantics<parallel>], iteration_bounds = array<i64: 2>, scalar_prefetch = 0 : i64, scratch_operands = 0 : i64, tpu.core_type = #tpu.core_type<tc>, window_params = [{transform_indices = @transform_0, window_bounds = array<i64: 1, 16, 128>}, {pipeline_mode = #tpu.pipeline_mode<synchronous>, transform_indices = @transform_1, window_bounds = array<i64: 10, 16, 48>}, {pipeline_mode = #tpu.pipeline_mode<synchronous>, transform_indices = @transform_2, window_bounds = array<i64: 10, 16, 1>}, {transform_indices = @transform_3, window_bounds = array<i64: 1, 16, 128>}]} {
    %0 = tpu.iota {dimensions = array<i32: 1>} : vector<16x128xi32>
    %c0 = arith.constant 0 : index
    %c0_0 = arith.constant 0 : index
    %c0_1 = arith.constant 0 : index
    %1 = vector.load %arg1[%c0, %c0_0, %c0_1] : memref<1x16x128xf32, #tpu.memory_space<vmem>>, vector<1x16x128xf32>
    %2 = vector.shape_cast %1 : vector<1x16x128xf32> to vector<16x128xf32>
    %c1_i32 = arith.constant 1 : i32
    %3 = tpu.dynamic_rotate %2 by %c1_i32 dim 1 : vector<16x128xf32>, i32 -> vector<16x128xf32>
    %c1_i32_2 = arith.constant 1 : i32
    %4 = vector.broadcast %c1_i32_2 : i32 to vector<16x128xi32>
    %5 = arith.cmpi sge, %0, %4 : vector<16x128xi32>
    %cst = arith.constant 0.000000e+00 : f32
    %6 = vector.broadcast %cst : f32 to vector<16x128xf32>
    %7 = arith.select %5, %3, %6 : vector<16x128xi1>, vector<16x128xf32>
    %c127_i32 = arith.constant 127 : i32
    %8 = tpu.dynamic_rotate %2 by %c127_i32 dim 1 : vector<16x128xf32>, i32 -> vector<16x128xf32>
    %c127_i32_3 = arith.constant 127 : i32
    %9 = vector.broadcast %c127_i32_3 : i32 to vector<16x128xi32>
    %10 = arith.cmpi slt, %0, %9 : vector<16x128xi32>
    %cst_4 = arith.constant 0.000000e+00 : f32
    %11 = vector.broadcast %cst_4 : f32 to vector<16x128xf32>
    %12 = arith.select %10, %8, %11 : vector<16x128xi1>, vector<16x128xf32>
    %13 = tpu.concatenate %7, %2, %12 in 0 : vector<16x128xf32>, vector<16x128xf32>, vector<16x128xf32> -> vector<48x128xf32>
    %c0_5 = arith.constant 0 : index
    %c0_6 = arith.constant 0 : index
    %c0_7 = arith.constant 0 : index
    %14 = vector.load %arg2[%c0_5, %c0_6, %c0_7] : memref<10x16x48xf32, #tpu.memory_space<vmem>>, vector<1x16x48xf32>
    %15 = vector.shape_cast %14 : vector<1x16x48xf32> to vector<16x48xf32>
    %cst_8 = arith.constant dense<0.000000e+00> : vector<16x128xf32>
    %16 = tpu.matmul %15, %13, %cst_8 {dimension_numbers = #tpu.dot_dimension_numbers<[1], [0], [0], [1], [0, 0, 1, 1], [], []>} : vector<16x48xf32>, vector<48x128xf32>, vector<16x128xf32> -> vector<16x128xf32>
    %c0_9 = arith.constant 0 : index
    %c0_10 = arith.constant 0 : index
    %c0_11 = arith.constant 0 : index
    %17 = vector.load %arg3[%c0_9, %c0_10, %c0_11] : memref<10x16x1xf32, #tpu.memory_space<vmem>>, vector<1x16x1xf32>
    %18 = vector.shape_cast %17 : vector<1x16x1xf32> to vector<16x1xf32>
    %19 = vector.broadcast %18 : vector<16x1xf32> to vector<16x128xf32>
    %20 = arith.addf %16, %19 : vector<16x128xf32>
    %21 = math.tanh %20 : vector<16x128xf32>
    %c1_i32_12 = arith.constant 1 : i32
    %22 = tpu.dynamic_rotate %21 by %c1_i32_12 dim 1 : vector<16x128xf32>, i32 -> vector<16x128xf32>
    %c1_i32_13 = arith.constant 1 : i32
    %23 = vector.broadcast %c1_i32_13 : i32 to vector<16x128xi32>
    %24 = arith.cmpi sge, %0, %23 : vector<16x128xi32>
    %cst_14 = arith.constant 0.000000e+00 : f32
    %25 = vector.broadcast %cst_14 : f32 to vector<16x128xf32>
    %26 = arith.select %24, %22, %25 : vector<16x128xi1>, vector<16x128xf32>
    %c127_i32_15 = arith.constant 127 : i32
    %27 = tpu.dynamic_rotate %21 by %c127_i32_15 dim 1 : vector<16x128xf32>, i32 -> vector<16x128xf32>
    %c127_i32_16 = arith.constant 127 : i32
    %28 = vector.broadcast %c127_i32_16 : i32 to vector<16x128xi32>
    %29 = arith.cmpi slt, %0, %28 : vector<16x128xi32>
    %cst_17 = arith.constant 0.000000e+00 : f32
    %30 = vector.broadcast %cst_17 : f32 to vector<16x128xf32>
    %31 = arith.select %29, %27, %30 : vector<16x128xi1>, vector<16x128xf32>
    %32 = tpu.concatenate %26, %21, %31 in 0 : vector<16x128xf32>, vector<16x128xf32>, vector<16x128xf32> -> vector<48x128xf32>
    %c1 = arith.constant 1 : index
    %c0_18 = arith.constant 0 : index
    %c0_19 = arith.constant 0 : index
    %33 = vector.load %arg2[%c1, %c0_18, %c0_19] : memref<10x16x48xf32, #tpu.memory_space<vmem>>, vector<1x16x48xf32>
    %34 = vector.shape_cast %33 : vector<1x16x48xf32> to vector<16x48xf32>
    %cst_20 = arith.constant dense<0.000000e+00> : vector<16x128xf32>
    %35 = tpu.matmul %34, %32, %cst_20 {dimension_numbers = #tpu.dot_dimension_numbers<[1], [0], [0], [1], [0, 0, 1, 1], [], []>} : vector<16x48xf32>, vector<48x128xf32>, vector<16x128xf32> -> vector<16x128xf32>
    %c1_21 = arith.constant 1 : index
    %c0_22 = arith.constant 0 : index
    %c0_23 = arith.constant 0 : index
    %36 = vector.load %arg3[%c1_21, %c0_22, %c0_23] : memref<10x16x1xf32, #tpu.memory_space<vmem>>, vector<1x16x1xf32>
    %37 = vector.shape_cast %36 : vector<1x16x1xf32> to vector<16x1xf32>
    %38 = vector.broadcast %37 : vector<16x1xf32> to vector<16x128xf32>
    %39 = arith.addf %35, %38 : vector<16x128xf32>
    %c1_i32_24 = arith.constant 1 : i32
    %40 = tpu.dynamic_rotate %39 by %c1_i32_24 dim 1 : vector<16x128xf32>, i32 -> vector<16x128xf32>
    %c1_i32_25 = arith.constant 1 : i32
    %41 = vector.broadcast %c1_i32_25 : i32 to vector<16x128xi32>
    %42 = arith.cmpi sge, %0, %41 : vector<16x128xi32>
    %cst_26 = arith.constant 0.000000e+00 : f32
    %43 = vector.broadcast %cst_26 : f32 to vector<16x128xf32>
    %44 = arith.select %42, %40, %43 : vector<16x128xi1>, vector<16x128xf32>
    %c127_i32_27 = arith.constant 127 : i32
    %45 = tpu.dynamic_rotate %39 by %c127_i32_27 dim 1 : vector<16x128xf32>, i32 -> vector<16x128xf32>
    %c127_i32_28 = arith.constant 127 : i32
    %46 = vector.broadcast %c127_i32_28 : i32 to vector<16x128xi32>
    %47 = arith.cmpi slt, %0, %46 : vector<16x128xi32>
    %cst_29 = arith.constant 0.000000e+00 : f32
    %48 = vector.broadcast %cst_29 : f32 to vector<16x128xf32>
    %49 = arith.select %47, %45, %48 : vector<16x128xi1>, vector<16x128xf32>
    %50 = tpu.concatenate %44, %39, %49 in 0 : vector<16x128xf32>, vector<16x128xf32>, vector<16x128xf32> -> vector<48x128xf32>
    %c2 = arith.constant 2 : index
    %c0_30 = arith.constant 0 : index
    %c0_31 = arith.constant 0 : index
    %51 = vector.load %arg2[%c2, %c0_30, %c0_31] : memref<10x16x48xf32, #tpu.memory_space<vmem>>, vector<1x16x48xf32>
    %52 = vector.shape_cast %51 : vector<1x16x48xf32> to vector<16x48xf32>
    %cst_32 = arith.constant dense<0.000000e+00> : vector<16x128xf32>
    %53 = tpu.matmul %52, %50, %cst_32 {dimension_numbers = #tpu.dot_dimension_numbers<[1], [0], [0], [1], [0, 0, 1, 1], [], []>} : vector<16x48xf32>, vector<48x128xf32>, vector<16x128xf32> -> vector<16x128xf32>
    %c2_33 = arith.constant 2 : index
    %c0_34 = arith.constant 0 : index
    %c0_35 = arith.constant 0 : index
    %54 = vector.load %arg3[%c2_33, %c0_34, %c0_35] : memref<10x16x1xf32, #tpu.memory_space<vmem>>, vector<1x16x1xf32>
    %55 = vector.shape_cast %54 : vector<1x16x1xf32> to vector<16x1xf32>
    %56 = vector.broadcast %55 : vector<16x1xf32> to vector<16x128xf32>
    %57 = arith.addf %53, %56 : vector<16x128xf32>
    %58 = math.tanh %57 : vector<16x128xf32>
    %c1_i32_36 = arith.constant 1 : i32
    %59 = tpu.dynamic_rotate %58 by %c1_i32_36 dim 1 : vector<16x128xf32>, i32 -> vector<16x128xf32>
    %c1_i32_37 = arith.constant 1 : i32
    %60 = vector.broadcast %c1_i32_37 : i32 to vector<16x128xi32>
    %61 = arith.cmpi sge, %0, %60 : vector<16x128xi32>
    %cst_38 = arith.constant 0.000000e+00 : f32
    %62 = vector.broadcast %cst_38 : f32 to vector<16x128xf32>
    %63 = arith.select %61, %59, %62 : vector<16x128xi1>, vector<16x128xf32>
    %c127_i32_39 = arith.constant 127 : i32
    %64 = tpu.dynamic_rotate %58 by %c127_i32_39 dim 1 : vector<16x128xf32>, i32 -> vector<16x128xf32>
    %c127_i32_40 = arith.constant 127 : i32
    %65 = vector.broadcast %c127_i32_40 : i32 to vector<16x128xi32>
    %66 = arith.cmpi slt, %0, %65 : vector<16x128xi32>
    %cst_41 = arith.constant 0.000000e+00 : f32
    %67 = vector.broadcast %cst_41 : f32 to vector<16x128xf32>
    %68 = arith.select %66, %64, %67 : vector<16x128xi1>, vector<16x128xf32>
    %69 = tpu.concatenate %63, %58, %68 in 0 : vector<16x128xf32>, vector<16x128xf32>, vector<16x128xf32> -> vector<48x128xf32>
    %c3 = arith.constant 3 : index
    %c0_42 = arith.constant 0 : index
    %c0_43 = arith.constant 0 : index
    %70 = vector.load %arg2[%c3, %c0_42, %c0_43] : memref<10x16x48xf32, #tpu.memory_space<vmem>>, vector<1x16x48xf32>
    %71 = vector.shape_cast %70 : vector<1x16x48xf32> to vector<16x48xf32>
    %cst_44 = arith.constant dense<0.000000e+00> : vector<16x128xf32>
    %72 = tpu.matmul %71, %69, %cst_44 {dimension_numbers = #tpu.dot_dimension_numbers<[1], [0], [0], [1], [0, 0, 1, 1], [], []>} : vector<16x48xf32>, vector<48x128xf32>, vector<16x128xf32> -> vector<16x128xf32>
    %c3_45 = arith.constant 3 : index
    %c0_46 = arith.constant 0 : index
    %c0_47 = arith.constant 0 : index
    %73 = vector.load %arg3[%c3_45, %c0_46, %c0_47] : memref<10x16x1xf32, #tpu.memory_space<vmem>>, vector<1x16x1xf32>
    %74 = vector.shape_cast %73 : vector<1x16x1xf32> to vector<16x1xf32>
    %75 = vector.broadcast %74 : vector<16x1xf32> to vector<16x128xf32>
    %76 = arith.addf %72, %75 : vector<16x128xf32>
    %c1_i32_48 = arith.constant 1 : i32
    %77 = tpu.dynamic_rotate %76 by %c1_i32_48 dim 1 : vector<16x128xf32>, i32 -> vector<16x128xf32>
    %c1_i32_49 = arith.constant 1 : i32
    %78 = vector.broadcast %c1_i32_49 : i32 to vector<16x128xi32>
    %79 = arith.cmpi sge, %0, %78 : vector<16x128xi32>
    %cst_50 = arith.constant 0.000000e+00 : f32
    %80 = vector.broadcast %cst_50 : f32 to vector<16x128xf32>
    %81 = arith.select %79, %77, %80 : vector<16x128xi1>, vector<16x128xf32>
    %c127_i32_51 = arith.constant 127 : i32
    %82 = tpu.dynamic_rotate %76 by %c127_i32_51 dim 1 : vector<16x128xf32>, i32 -> vector<16x128xf32>
    %c127_i32_52 = arith.constant 127 : i32
    %83 = vector.broadcast %c127_i32_52 : i32 to vector<16x128xi32>
    %84 = arith.cmpi slt, %0, %83 : vector<16x128xi32>
    %cst_53 = arith.constant 0.000000e+00 : f32
    %85 = vector.broadcast %cst_53 : f32 to vector<16x128xf32>
    %86 = arith.select %84, %82, %85 : vector<16x128xi1>, vector<16x128xf32>
    %87 = tpu.concatenate %81, %76, %86 in 0 : vector<16x128xf32>, vector<16x128xf32>, vector<16x128xf32> -> vector<48x128xf32>
    %c4 = arith.constant 4 : index
    %c0_54 = arith.constant 0 : index
    %c0_55 = arith.constant 0 : index
    %88 = vector.load %arg2[%c4, %c0_54, %c0_55] : memref<10x16x48xf32, #tpu.memory_space<vmem>>, vector<1x16x48xf32>
    %89 = vector.shape_cast %88 : vector<1x16x48xf32> to vector<16x48xf32>
    %cst_56 = arith.constant dense<0.000000e+00> : vector<16x128xf32>
    %90 = tpu.matmul %89, %87, %cst_56 {dimension_numbers = #tpu.dot_dimension_numbers<[1], [0], [0], [1], [0, 0, 1, 1], [], []>} : vector<16x48xf32>, vector<48x128xf32>, vector<16x128xf32> -> vector<16x128xf32>
    %c4_57 = arith.constant 4 : index
    %c0_58 = arith.constant 0 : index
    %c0_59 = arith.constant 0 : index
    %91 = vector.load %arg3[%c4_57, %c0_58, %c0_59] : memref<10x16x1xf32, #tpu.memory_space<vmem>>, vector<1x16x1xf32>
    %92 = vector.shape_cast %91 : vector<1x16x1xf32> to vector<16x1xf32>
    %93 = vector.broadcast %92 : vector<16x1xf32> to vector<16x128xf32>
    %94 = arith.addf %90, %93 : vector<16x128xf32>
    %95 = math.tanh %94 : vector<16x128xf32>
    %c1_i32_60 = arith.constant 1 : i32
    %96 = tpu.dynamic_rotate %95 by %c1_i32_60 dim 1 : vector<16x128xf32>, i32 -> vector<16x128xf32>
    %c1_i32_61 = arith.constant 1 : i32
    %97 = vector.broadcast %c1_i32_61 : i32 to vector<16x128xi32>
    %98 = arith.cmpi sge, %0, %97 : vector<16x128xi32>
    %cst_62 = arith.constant 0.000000e+00 : f32
    %99 = vector.broadcast %cst_62 : f32 to vector<16x128xf32>
    %100 = arith.select %98, %96, %99 : vector<16x128xi1>, vector<16x128xf32>
    %c127_i32_63 = arith.constant 127 : i32
    %101 = tpu.dynamic_rotate %95 by %c127_i32_63 dim 1 : vector<16x128xf32>, i32 -> vector<16x128xf32>
    %c127_i32_64 = arith.constant 127 : i32
    %102 = vector.broadcast %c127_i32_64 : i32 to vector<16x128xi32>
    %103 = arith.cmpi slt, %0, %102 : vector<16x128xi32>
    %cst_65 = arith.constant 0.000000e+00 : f32
    %104 = vector.broadcast %cst_65 : f32 to vector<16x128xf32>
    %105 = arith.select %103, %101, %104 : vector<16x128xi1>, vector<16x128xf32>
    %106 = tpu.concatenate %100, %95, %105 in 0 : vector<16x128xf32>, vector<16x128xf32>, vector<16x128xf32> -> vector<48x128xf32>
    %c5 = arith.constant 5 : index
    %c0_66 = arith.constant 0 : index
    %c0_67 = arith.constant 0 : index
    %107 = vector.load %arg2[%c5, %c0_66, %c0_67] : memref<10x16x48xf32, #tpu.memory_space<vmem>>, vector<1x16x48xf32>
    %108 = vector.shape_cast %107 : vector<1x16x48xf32> to vector<16x48xf32>
    %cst_68 = arith.constant dense<0.000000e+00> : vector<16x128xf32>
    %109 = tpu.matmul %108, %106, %cst_68 {dimension_numbers = #tpu.dot_dimension_numbers<[1], [0], [0], [1], [0, 0, 1, 1], [], []>} : vector<16x48xf32>, vector<48x128xf32>, vector<16x128xf32> -> vector<16x128xf32>
    %c5_69 = arith.constant 5 : index
    %c0_70 = arith.constant 0 : index
    %c0_71 = arith.constant 0 : index
    %110 = vector.load %arg3[%c5_69, %c0_70, %c0_71] : memref<10x16x1xf32, #tpu.memory_space<vmem>>, vector<1x16x1xf32>
    %111 = vector.shape_cast %110 : vector<1x16x1xf32> to vector<16x1xf32>
    %112 = vector.broadcast %111 : vector<16x1xf32> to vector<16x128xf32>
    %113 = arith.addf %109, %112 : vector<16x128xf32>
    %c1_i32_72 = arith.constant 1 : i32
    %114 = tpu.dynamic_rotate %113 by %c1_i32_72 dim 1 : vector<16x128xf32>, i32 -> vector<16x128xf32>
    %c1_i32_73 = arith.constant 1 : i32
    %115 = vector.broadcast %c1_i32_73 : i32 to vector<16x128xi32>
    %116 = arith.cmpi sge, %0, %115 : vector<16x128xi32>
    %cst_74 = arith.constant 0.000000e+00 : f32
    %117 = vector.broadcast %cst_74 : f32 to vector<16x128xf32>
    %118 = arith.select %116, %114, %117 : vector<16x128xi1>, vector<16x128xf32>
    %c127_i32_75 = arith.constant 127 : i32
    %119 = tpu.dynamic_rotate %113 by %c127_i32_75 dim 1 : vector<16x128xf32>, i32 -> vector<16x128xf32>
    %c127_i32_76 = arith.constant 127 : i32
    %120 = vector.broadcast %c127_i32_76 : i32 to vector<16x128xi32>
    %121 = arith.cmpi slt, %0, %120 : vector<16x128xi32>
    %cst_77 = arith.constant 0.000000e+00 : f32
    %122 = vector.broadcast %cst_77 : f32 to vector<16x128xf32>
    %123 = arith.select %121, %119, %122 : vector<16x128xi1>, vector<16x128xf32>
    %124 = tpu.concatenate %118, %113, %123 in 0 : vector<16x128xf32>, vector<16x128xf32>, vector<16x128xf32> -> vector<48x128xf32>
    %c6 = arith.constant 6 : index
    %c0_78 = arith.constant 0 : index
    %c0_79 = arith.constant 0 : index
    %125 = vector.load %arg2[%c6, %c0_78, %c0_79] : memref<10x16x48xf32, #tpu.memory_space<vmem>>, vector<1x16x48xf32>
    %126 = vector.shape_cast %125 : vector<1x16x48xf32> to vector<16x48xf32>
    %cst_80 = arith.constant dense<0.000000e+00> : vector<16x128xf32>
    %127 = tpu.matmul %126, %124, %cst_80 {dimension_numbers = #tpu.dot_dimension_numbers<[1], [0], [0], [1], [0, 0, 1, 1], [], []>} : vector<16x48xf32>, vector<48x128xf32>, vector<16x128xf32> -> vector<16x128xf32>
    %c6_81 = arith.constant 6 : index
    %c0_82 = arith.constant 0 : index
    %c0_83 = arith.constant 0 : index
    %128 = vector.load %arg3[%c6_81, %c0_82, %c0_83] : memref<10x16x1xf32, #tpu.memory_space<vmem>>, vector<1x16x1xf32>
    %129 = vector.shape_cast %128 : vector<1x16x1xf32> to vector<16x1xf32>
    %130 = vector.broadcast %129 : vector<16x1xf32> to vector<16x128xf32>
    %131 = arith.addf %127, %130 : vector<16x128xf32>
    %132 = math.tanh %131 : vector<16x128xf32>
    %c1_i32_84 = arith.constant 1 : i32
    %133 = tpu.dynamic_rotate %132 by %c1_i32_84 dim 1 : vector<16x128xf32>, i32 -> vector<16x128xf32>
    %c1_i32_85 = arith.constant 1 : i32
    %134 = vector.broadcast %c1_i32_85 : i32 to vector<16x128xi32>
    %135 = arith.cmpi sge, %0, %134 : vector<16x128xi32>
    %cst_86 = arith.constant 0.000000e+00 : f32
    %136 = vector.broadcast %cst_86 : f32 to vector<16x128xf32>
    %137 = arith.select %135, %133, %136 : vector<16x128xi1>, vector<16x128xf32>
    %c127_i32_87 = arith.constant 127 : i32
    %138 = tpu.dynamic_rotate %132 by %c127_i32_87 dim 1 : vector<16x128xf32>, i32 -> vector<16x128xf32>
    %c127_i32_88 = arith.constant 127 : i32
    %139 = vector.broadcast %c127_i32_88 : i32 to vector<16x128xi32>
    %140 = arith.cmpi slt, %0, %139 : vector<16x128xi32>
    %cst_89 = arith.constant 0.000000e+00 : f32
    %141 = vector.broadcast %cst_89 : f32 to vector<16x128xf32>
    %142 = arith.select %140, %138, %141 : vector<16x128xi1>, vector<16x128xf32>
    %143 = tpu.concatenate %137, %132, %142 in 0 : vector<16x128xf32>, vector<16x128xf32>, vector<16x128xf32> -> vector<48x128xf32>
    %c7 = arith.constant 7 : index
    %c0_90 = arith.constant 0 : index
    %c0_91 = arith.constant 0 : index
    %144 = vector.load %arg2[%c7, %c0_90, %c0_91] : memref<10x16x48xf32, #tpu.memory_space<vmem>>, vector<1x16x48xf32>
    %145 = vector.shape_cast %144 : vector<1x16x48xf32> to vector<16x48xf32>
    %cst_92 = arith.constant dense<0.000000e+00> : vector<16x128xf32>
    %146 = tpu.matmul %145, %143, %cst_92 {dimension_numbers = #tpu.dot_dimension_numbers<[1], [0], [0], [1], [0, 0, 1, 1], [], []>} : vector<16x48xf32>, vector<48x128xf32>, vector<16x128xf32> -> vector<16x128xf32>
    %c7_93 = arith.constant 7 : index
    %c0_94 = arith.constant 0 : index
    %c0_95 = arith.constant 0 : index
    %147 = vector.load %arg3[%c7_93, %c0_94, %c0_95] : memref<10x16x1xf32, #tpu.memory_space<vmem>>, vector<1x16x1xf32>
    %148 = vector.shape_cast %147 : vector<1x16x1xf32> to vector<16x1xf32>
    %149 = vector.broadcast %148 : vector<16x1xf32> to vector<16x128xf32>
    %150 = arith.addf %146, %149 : vector<16x128xf32>
    %151 = arith.addf %150, %39 : vector<16x128xf32>
    %c1_i32_96 = arith.constant 1 : i32
    %152 = tpu.dynamic_rotate %151 by %c1_i32_96 dim 1 : vector<16x128xf32>, i32 -> vector<16x128xf32>
    %c1_i32_97 = arith.constant 1 : i32
    %153 = vector.broadcast %c1_i32_97 : i32 to vector<16x128xi32>
    %154 = arith.cmpi sge, %0, %153 : vector<16x128xi32>
    %cst_98 = arith.constant 0.000000e+00 : f32
    %155 = vector.broadcast %cst_98 : f32 to vector<16x128xf32>
    %156 = arith.select %154, %152, %155 : vector<16x128xi1>, vector<16x128xf32>
    %c127_i32_99 = arith.constant 127 : i32
    %157 = tpu.dynamic_rotate %151 by %c127_i32_99 dim 1 : vector<16x128xf32>, i32 -> vector<16x128xf32>
    %c127_i32_100 = arith.constant 127 : i32
    %158 = vector.broadcast %c127_i32_100 : i32 to vector<16x128xi32>
    %159 = arith.cmpi slt, %0, %158 : vector<16x128xi32>
    %cst_101 = arith.constant 0.000000e+00 : f32
    %160 = vector.broadcast %cst_101 : f32 to vector<16x128xf32>
    %161 = arith.select %159, %157, %160 : vector<16x128xi1>, vector<16x128xf32>
    %162 = tpu.concatenate %156, %151, %161 in 0 : vector<16x128xf32>, vector<16x128xf32>, vector<16x128xf32> -> vector<48x128xf32>
    %c8 = arith.constant 8 : index
    %c0_102 = arith.constant 0 : index
    %c0_103 = arith.constant 0 : index
    %163 = vector.load %arg2[%c8, %c0_102, %c0_103] : memref<10x16x48xf32, #tpu.memory_space<vmem>>, vector<1x16x48xf32>
    %164 = vector.shape_cast %163 : vector<1x16x48xf32> to vector<16x48xf32>
    %cst_104 = arith.constant dense<0.000000e+00> : vector<16x128xf32>
    %165 = tpu.matmul %164, %162, %cst_104 {dimension_numbers = #tpu.dot_dimension_numbers<[1], [0], [0], [1], [0, 0, 1, 1], [], []>} : vector<16x48xf32>, vector<48x128xf32>, vector<16x128xf32> -> vector<16x128xf32>
    %c8_105 = arith.constant 8 : index
    %c0_106 = arith.constant 0 : index
    %c0_107 = arith.constant 0 : index
    %166 = vector.load %arg3[%c8_105, %c0_106, %c0_107] : memref<10x16x1xf32, #tpu.memory_space<vmem>>, vector<1x16x1xf32>
    %167 = vector.shape_cast %166 : vector<1x16x1xf32> to vector<16x1xf32>
    %168 = vector.broadcast %167 : vector<16x1xf32> to vector<16x128xf32>
    %169 = arith.addf %165, %168 : vector<16x128xf32>
    %170 = math.tanh %169 : vector<16x128xf32>
    %c1_i32_108 = arith.constant 1 : i32
    %171 = tpu.dynamic_rotate %170 by %c1_i32_108 dim 1 : vector<16x128xf32>, i32 -> vector<16x128xf32>
    %c1_i32_109 = arith.constant 1 : i32
    %172 = vector.broadcast %c1_i32_109 : i32 to vector<16x128xi32>
    %173 = arith.cmpi sge, %0, %172 : vector<16x128xi32>
    %cst_110 = arith.constant 0.000000e+00 : f32
    %174 = vector.broadcast %cst_110 : f32 to vector<16x128xf32>
    %175 = arith.select %173, %171, %174 : vector<16x128xi1>, vector<16x128xf32>
    %c127_i32_111 = arith.constant 127 : i32
    %176 = tpu.dynamic_rotate %170 by %c127_i32_111 dim 1 : vector<16x128xf32>, i32 -> vector<16x128xf32>
    %c127_i32_112 = arith.constant 127 : i32
    %177 = vector.broadcast %c127_i32_112 : i32 to vector<16x128xi32>
    %178 = arith.cmpi slt, %0, %177 : vector<16x128xi32>
    %cst_113 = arith.constant 0.000000e+00 : f32
    %179 = vector.broadcast %cst_113 : f32 to vector<16x128xf32>
    %180 = arith.select %178, %176, %179 : vector<16x128xi1>, vector<16x128xf32>
    %181 = tpu.concatenate %175, %170, %180 in 0 : vector<16x128xf32>, vector<16x128xf32>, vector<16x128xf32> -> vector<48x128xf32>
    %c9 = arith.constant 9 : index
    %c0_114 = arith.constant 0 : index
    %c0_115 = arith.constant 0 : index
    %182 = vector.load %arg2[%c9, %c0_114, %c0_115] : memref<10x16x48xf32, #tpu.memory_space<vmem>>, vector<1x16x48xf32>
    %183 = vector.shape_cast %182 : vector<1x16x48xf32> to vector<16x48xf32>
    %cst_116 = arith.constant dense<0.000000e+00> : vector<16x128xf32>
    %184 = tpu.matmul %183, %181, %cst_116 {dimension_numbers = #tpu.dot_dimension_numbers<[1], [0], [0], [1], [0, 0, 1, 1], [], []>} : vector<16x48xf32>, vector<48x128xf32>, vector<16x128xf32> -> vector<16x128xf32>
    %c9_117 = arith.constant 9 : index
    %c0_118 = arith.constant 0 : index
    %c0_119 = arith.constant 0 : index
    %185 = vector.load %arg3[%c9_117, %c0_118, %c0_119] : memref<10x16x1xf32, #tpu.memory_space<vmem>>, vector<1x16x1xf32>
    %186 = vector.shape_cast %185 : vector<1x16x1xf32> to vector<16x1xf32>
    %187 = vector.broadcast %186 : vector<16x1xf32> to vector<16x128xf32>
    %188 = arith.addf %184, %187 : vector<16x128xf32>
    %189 = arith.mulf %188, %2 : vector<16x128xf32>
    %190 = math.tanh %189 : vector<16x128xf32>
    %c0_120 = arith.constant 0 : index
    %c0_121 = arith.constant 0 : index
    %c0_122 = arith.constant 0 : index
    %191 = vector.load %arg4[%c0_120, %c0_121, %c0_122] : memref<1x16x128xf32, #tpu.memory_space<vmem>>, vector<1x16x128xf32>
    %192 = vector.shape_cast %191 : vector<1x16x128xf32> to vector<16x128xf32>
    %193 = vector.shape_cast %190 : vector<16x128xf32> to vector<1x16x128xf32>
    tpu.vector_store %arg4[%c0_120, %c0_121, %c0_122], %193 {strides = array<i32>} : memref<1x16x128xf32, #tpu.memory_space<vmem>>, vector<1x16x128xf32>,
    return
  }
  func.func @transform_0(%arg0: i32) -> (i32, i32, i32) {
    %c0_i32 = arith.constant 0 : i32
    %c0_i32_0 = arith.constant 0 : i32
    %c0_i32_1 = arith.constant 0 : i32
    return %arg0, %c0_i32, %c0_i32_0 : i32, i32, i32
  }
  func.func @transform_1(%arg0: i32) -> (i32, i32, i32) {
    %c0_i32 = arith.constant 0 : i32
    %c0_i32_0 = arith.constant 0 : i32
    %c0_i32_1 = arith.constant 0 : i32
    %c0_i32_2 = arith.constant 0 : i32
    return %c0_i32, %c0_i32_0, %c0_i32_1 : i32, i32, i32
  }
  func.func @transform_2(%arg0: i32) -> (i32, i32, i32) {
    %c0_i32 = arith.constant 0 : i32
    %c0_i32_0 = arith.constant 0 : i32
    %c0_i32_1 = arith.constant 0 : i32
    %c0_i32_2 = arith.constant 0 : i32
    return %c0_i32, %c0_i32_0, %c0_i32_1 : i32, i32, i32
  }
  func.func @transform_3(%arg0: i32) -> (i32, i32, i32) {
    %c0_i32 = arith.constant 0 : i32
    %c0_i32_0 = arith.constant 0 : i32
    %c0_i32_1 = arith.constant 0 : i32
    return %arg0, %c0_i32, %c0_i32_0 : i32, i32, i32
  }
}

</mosaic_0001>

<bundles_post_ra>
// kernel: tpu_custom_call.1
= control target key start
LH: loop header
LB: loop body
LE: loop exit
PB: predicated region body
PF: predicated region fallthrough
CT: control target
= control target key end

     0   :  { %8 = vsyncpa [#allocation3], 0  ;;  %s2463_s0 = inlined_call_operand.hbm [shape: f32[2,16,128], index: 0, kind: input, shape index: {}]   ;;  %s2464_s1 = inlined_call_operand.vmem [shape: f32[10,16,48], index: 1, kind: input, shape index: {}]   ;;  %s2465_s2 = inlined_call_operand.vmem [shape: f32[10,16,1], index: 2, kind: input, shape index: {}]   ;;  %s2466_s3 = inlined_call_operand.hbm [shape: f32[2,16,128], index: 3, kind: output, shape index: {}]  }
   0x1   :  { %10 = vsyncpa [#allocation3 + $0x1], 0 }
   0x2   :  { %11 = vsyncpa [#allocation4], 0 }
   0x3   :  { %13 = vsyncpa [#allocation4 + $0x1], 0  ;;  %s1933_s12 = smov 0   ;;  %s1935_s13 = smov 0  }
   0x4   :  { %s1937_s14 = smov 0   ;;  %s1939_s15 = smov 0  }
   0x5 LB: > { %s1954_s16 = sadd.s32 4294967295, %s1902_s15   ;;  %s1389_s17 = sadd.s32 4294967294, %s1902_s15   ;;  %s1902_s15 = sphi %s1939_s15, %s2481_s15   ;;  %s1898_s14 = sphi %s1937_s14, %s2480_s14   ;;  %s1894_s13 = sphi %s1935_s13, %s2479_s13   ;;  %s1890_s12 = sphi %s1933_s12, %s2478_s12  }
   0x6   : > { %s1958_s18 = sadd.s32 1, %s1902_s15   ;;  %s26_s19 = sadd.s32 1, %s1898_s14 }
   0x7   : > { %s23_s20 = ssub.s32 %s1902_s15, %s1958_s18  ;;  %p33_p0 = scmp.ne.s32.totalorder %s1898_s14, %s1894_s13 }
   0x8   : > { %p24_p1 = scmp.eq.s32.totalorder %s23_s20, 0  ;;  %p34_p2 = scmp.eq.s32.totalorder %s1902_s15, 0 }
   0x9   : > { %p39_p3 = scmp.ne.s32.totalorder %s1894_s13, %s1890_s12  ;;  %p40_p4 = scmp.eq.s32.totalorder %s1954_s16, 0 }
   0xa   : > { %s1970_s21 = scalar_select %p24_p1, %s1898_s14, %s26_s19  }
   0xb   : > { %p1972_p5 = por %p34_p2, %p33_p0  ;;  %p1976_p6 = por %p40_p4, %p39_p3 }
   0xc   : > { %p105_p7 = scmp.eq.s32.totalorder %s1954_s16, 1  ;;  %p111_p8 = scmp.eq.s32.totalorder %s1389_s17, 1 }
   0xd   : > { %s2470_s23 = scalar_select %p1976_p6, 1, 0 }
   0xe   : > { %p1743_p10 = scmp.lt.s32.totalorder %s1902_s15, 2  ;;  %p1983_p11 = por %p105_p7, %p33_p0 }
   0xf   : > { %p1987_p12 = por %p111_p8, %p39_p3  ;;  %s137_s26 = sand.u32 1, %s1898_s14  }
  0x10   : > { %s2471_s24 = scalar_select %p1983_p11, 1, 0 }
  0x11   : > { %s2472_s25 = scalar_select %p1987_p12, 1, 0 }
  0x12   : > { %s1499_s27 = sshll.u32 %s1902_s15, 8  ;;  %s1392_s28 = sshll.u32 %s137_s26, 4 }
  0x13   : > { %s1996_s4 = scalar_lea.hbm %s2463_s0, %s1499_s27  ;;  %s141_s5 = scalar_lea.vmem [#allocation2], %s1392_s28 }
  0x14   : > { %s148_s6 = sshll.u32 %s141_s5, 4  ;;  %p2000_p13 = pnand %p1743_p10, %p1972_p5  ;;  %s2004_s6 = int_to_ptr.vmem [resolvable:$true] %s148_s6 }
  0x15   : > { %s2006_s8 = scalar_lea.sflag [#allocation3], %s137_s26  ;;  %s1810_s9 = scalar_lea.hbm %s1996_s4, 256 }
  0x16   : > { %p1811_p0 = scmp.ne.s32.totalorder %s1996_s4, %s1810_s9  ;;  %p1812_p1 = pneg %p2000_p13 }
  0x17   : > { %s1815_s17 = scalar_lea.hbm %s2463_s0, 512  ;;  %p1816_p4 = scmp.lt.s32.totalorder %s1996_s4, %s2463_s0 }
  0x18   : > { %p1813_p2 = pnand %p1812_p1, %p1811_p0  ;;  %p1817_p5 = scmp.lt.s32.totalorder %s1815_s17, %s1810_s9 }
  0x1a   : > { %p1814_p3 = pneg %p1813_p2  ;;  %p1818_p7 = por %p1817_p5, %p1816_p4 }
  0x1c   : > { %p1819_p8 = pnand %p1818_p7, %p1814_p3 }
  0x1e   : > { %1822 = shalt.err (!%p1819_p8)
}
  0x1f   : > { %s1823_s22 = scalar_lea.vmem %s2004_s6, 256  ;;  %s1904_s26 = smov [#allocation2]  }
  0x20   : > { %p1824_p10 = scmp.ne.s32.totalorder %s2004_s6, %s1823_s22  ;;  %s1828_s27 = sshll.u32 %s1904_s26, 4  ;;  %s1829_s27 = int_to_ptr.vmem [resolvable:$false] %s1828_s27 }
  0x21   : > { %s1830_s28 = scalar_lea.vmem %s1829_s27, 512  ;;  %p1831_p2 = scmp.lt.s32.totalorder %s2004_s6, %s1829_s27 }
  0x22   : > { %p1826_p9 = pnand %p1824_p10, %p1812_p1  ;;  %p1832_p12 = scmp.lt.s32.totalorder %s1830_s28, %s1823_s22 }
  0x24   : > { %p1827_p0 = pneg %p1826_p9  ;;  %p1833_p11 = por %p1832_p12, %p1831_p2 }
  0x26   : > { %p1834_p6 = pnand %p1833_p11, %p1827_p0 }
  0x28   : > { %1837 = shalt.err (!%p1834_p6)
}
  0x29   : > { %s1905_s29 = smov 128   ;;  %s1906_s30 = smov 8  }
  0x2a   : > { %1738 = dma.hbm_to_vmem [thread:$0]  (!%p2000_p13), %s1996_s4, 256, %s2004_s6, %s2006_s8, %s1905_s29, %s1905_s29, %s1906_s30  }
  0x2b   : > { %p1395_p9 = scmp.ge.s32.totalorder %s1902_s15, 1  ;;  %p156_p1 = scmp.lt.s32.totalorder %s1902_s15, 3 }
  0x2d   : > { %p157_p3 = pnand %p1395_p9, %p156_p1 }
  0x2e   : > { %s2030_s5 = sand.u32 (!%p157_p3), 1, %s1894_s13   ;;  %p2474_p6 = scmp.ne.s32.totalorder (!%p157_p3), %s2470_s23, 0 }
  0x2f   : > { %160 = sbr.rel (%p157_p3) target bundleno = 3380 (0xd34), region = 32  ;;  %s1396_s9 = sshll.u32 (!%p157_p3), %s2030_s5, 4 }
  0x30   : > { %s163_s10 = scalar_lea.sflag (!%p157_p3), [#allocation3], %s2030_s5  ;;  %s166_s11 = scalar_lea.vmem (!%p157_p3), [#allocation2], %s1396_s9 }
  0x34   : > { %1881 = dma.done.wait (%p2474_p6), %s163_s10, 256  }
  0x35   : > { %1883 = vsyncadd (%p2474_p6), %s163_s10, 4294967040  ;;  %v2040_v0 = vld [vmem:[%s166_s11 + $0x8] sm:$0xff]  ;;  %v207_v1 = vld [vmem:[%s2464_s1] sm:$0xff]  ;;  %vm221_vm0 = vcmask 392192   ;;  %s1907_s7 = smov 127   ;;  %s1908_s8 = smov 1   ;;  %v189_v6 = vlaneseq }
  0x36   : > { %202 = vrot.lane.b32.xlu0 %v2040_v0, %s1907_s7  ;;  %195 = vrot.lane.b32.xlu1 %v2040_v0, %s1908_s8  ;;  %v2049_v2 = vld [vmem:[%s166_s11] sm:$0xff]  ;;  %v1909_v3 = vmov 0   ;;  %v210_v4 = vld [vmem:[%s2465_s2 + $0x8] sm:$0xff]  ;;  %s1500_s27 = sshll.u32 %s1954_s16, 8  ;;  %s188_s28 = scalar_lea.vmem [#allocation5], %s1396_s9 }
  0x37   : > { %1593 = vmatprep.mubr.msk.f32.mxu0 %vm221_vm0, %v207_v1  ;;  %1784 = vset.pattern.permute.xlu0 %v1909_v3  ;;  %v209_v5 = vld [vmem:[%s2465_s2] sm:$0xff]  ;;  %v2062_v7 = vand.u32 127, %v189_v6  ;;  %v208_v12 = vld [vmem:[%s2464_s1 + $0x8] sm:$0xff]  ;;  %v1404_v19 = vld [vmem:[%s2464_s1 + $0x10] sm:$0xff]  ;;  %s1316_s29 = sshll.u32 %s188_s28, 4  ;;  %s2418_s11 = scalar_lea.hbm %s2466_s3, %s1500_s27  ;;  %s2420_s29 = int_to_ptr.vmem [resolvable:$true] %s1316_s29 }
  0x38   : > { %1785 = vset.pattern.permute.xlu1 %v1909_v3  ;;  %1608 = vmatprep.mubr.msk.f32.mxu1 %vm221_vm0, %v1404_v19  ;;  %v1407_v22 = vld [vmem:[%s2465_s2 + $0x18] sm:$0xff]  ;;  %v1406_v23 = vld [vmem:[%s2465_s2 + $0x10] sm:$0xff]  ;;  %v1414_v31 = vld [vmem:[%s2464_s1 + $0x20] sm:$0xff]  ;;  %s1303_s4 = scalar_lea.sflag [#allocation4], %s2030_s5  ;;  %s1838_s6 = scalar_lea.vmem %s2420_s29, 256 }
  0x39   : > { %vm204_vm1 = vcmp.lt.s32.totalorder %v2062_v7, 127  ;;  %vm197_vm2 = vcmp.ge.s32.totalorder %v2062_v7, 1  ;;  %v1405_v28 = vld [vmem:[%s2464_s1 + $0x18] sm:$0xff]  ;;  %v1417_v36 = vld [vmem:[%s2465_s2 + $0x28] sm:$0xff]  ;;  %v1416_v37 = vld [vmem:[%s2465_s2 + $0x20] sm:$0xff]  ;;  %p1839_p11 = scmp.ne.s32.totalorder %s2420_s29, %s1838_s6  ;;  %p2475_p12 = scmp.ne.s32.totalorder %s2471_s24, 0 }
  0x3a   : > { %200 = vrot.lane.b32.xlu0 %v2049_v2, %s1907_s7  ;;  %193 = vrot.lane.b32.xlu1 %v2049_v2, %s1908_s8  ;;  %v1415_v42 = vld [vmem:[%s2464_s1 + $0x28] sm:$0xff]  ;;  %v1424_v49 = vld [vmem:[%s2464_s1 + $0x30] sm:$0xff]  ;;  %s1910_s16 = smov [#allocation5]  }
  0x3b   : > { %v1427_v52 = vld [vmem:[%s2465_s2 + $0x38] sm:$0xff]  ;;  %v1426_v53 = vld [vmem:[%s2465_s2 + $0x30] sm:$0xff]  ;;  %v1434_v61 = vld [vmem:[%s2464_s1 + $0x40] sm:$0xff]  ;;  %p1840_p13 = pnand %p1839_p11, %p2475_p12  ;;  %s1842_s9 = sshll.u32 %s1910_s16, 4  ;;  %s1843_s9 = int_to_ptr.vmem [resolvable:$false] %s1842_s9 }
  0x3c   : > { %v1425_v58 = vld [vmem:[%s2464_s1 + $0x38] sm:$0xff]  ;;  %s1844_s23 = scalar_lea.vmem %s1843_s9, 512  ;;  %p1845_p5 = scmp.lt.s32.totalorder %s2420_s29, %s1843_s9 }
  0x3d   : > { %p1841_p4 = pneg %p1840_p13  ;;  %p1846_p7 = scmp.lt.s32.totalorder %s1844_s23, %s1838_s6 }
  0x3e   : > { %218 = vperm.xlu0 %1784, %v210_v4   ;;  %213 = vperm.xlu1 %1785, %v209_v5   ;;  %v1437_v4 = vld [vmem:[%s2465_s2 + $0x48] sm:$0xff]  ;;  %v1436_v5 = vld [vmem:[%s2465_s2 + $0x40] sm:$0xff] }
  0x3f   : > { %p1847_p8 = por %p1846_p7, %p1845_p5 }
  0x41   : > { %p1848_p10 = pnand %p1847_p8, %p1841_p4 }
  0xa8   : > { %v203_v8 = vpop.permute.xlu0 %202  ;;  %v196_v10 = vpop.permute.xlu1 %195 }
  0xa9   : > { %1581 = vmatprep.subr.msk.mxu0 %vm204_vm1, %v203_v8 }
  0xaa   : > { %1582 = vmatpush3.msk.msra.mxu0 %vm204_vm1, %v203_v8 }
  0xac   : > { %v201_v9 = vpop.permute.xlu0 %200  ;;  %v194_v11 = vpop.permute.xlu1 %193 }
  0xad   : > { %1583 = vmatprep.subr.msk.mxu0 %vm204_vm1, %v201_v9 }
  0xae   : > { %1584 = vmatpush3.msk.msra.mxu0 %vm204_vm1, %v201_v9 }
  0xaf   : > { %1585 = vmatprep.subr.mxu0 %v2040_v0 }
  0xb0   : > { %1586 = vmatpush3.msra.mxu0 %v2040_v0 }
  0xb1   : > { %1587 = vmatprep.subr.mxu0 %v2049_v2 }
  0xb2   : > { %1588 = vmatpush3.msra.mxu0 %v2049_v2 }
  0xb3   : > { %1589 = vmatprep.subr.msk.mxu0 %vm197_vm2, %v196_v10 }
  0xb4   : > { %1590 = vmatpush3.msk.msra.mxu0 %vm197_vm2, %v196_v10 }
  0xb5   : > { %1591 = vmatprep.subr.msk.mxu0 %vm197_vm2, %v194_v11 }
  0xb6   : > { %1592 = vmatpush3.msk.msra.mxu0 %vm197_vm2, %v194_v11  ;;  %v1435_v11 = vld [vmem:[%s2464_s1 + $0x48] sm:$0xff] }
  0xb7   : > { %1594 = vmatmul.mubr.msk.f32.vlgmr.msra.gmra.mxu0 %vm221_vm0, %v208_v12 }
  0xb8   : > { %1623 = vmatprep.mubr.msk.f32.mxu0 %vm221_vm0, %v1414_v31 }
  0xb9   : > { %v219_v13 = vpop.permute.xlu0 %218  ;;  %v214_v15 = vpop.permute.xlu1 %213 }
 0x177   : > { %v1595_v14 = vpop.f32.mrf.mxu0 }
 0x178   : > { %v300_v16 = vadd.f32 %v1595_v14, %v219_v13 }
 0x179   : > { %v294_v17 = vpop.f32.mrf.mxu0 }
 0x17a   : > { %1786 = vtanh.f32 %v300_v16  ;;  %v295_v18 = vadd.f32 %v294_v17, %v214_v15 }
 0x17c   : > { %1788 = vtanh.f32 %v295_v18  ;;  %v1444_v18 = vld [vmem:[%s2464_s1 + $0x50] sm:$0xff] }
 0x187   : > { %v1787_v20 = vpop.eup %1786 }
 0x188   : > { %313 = vrot.lane.b32.xlu1 %v1787_v20, %s1907_s7 }
 0x189   : > { %v1789_v21 = vpop.eup %1788 }
 0x18a   : > { %311 = vrot.lane.b32.xlu0 %v1789_v21, %s1907_s7 }
 0x18c   : > { %307 = vrot.lane.b32.xlu1 %v1787_v20, %s1908_s8 }
 0x18e   : > { %305 = vrot.lane.b32.xlu0 %v1789_v21, %s1908_s8 }
 0x190   : > { %330 = vperm.xlu1 %1785, %v1407_v22   ;;  %v1446_v22 = vld [vmem:[%s2465_s2 + $0x50] sm:$0xff] }
 0x192   : > { %325 = vperm.xlu0 %1784, %v1406_v23  }
 0x1fa   : > { %v314_v24 = vpop.permute.xlu1 %313 }
 0x1fb   : > { %1596 = vmatprep.subr.msk.mxu1 %vm204_vm1, %v314_v24 }
 0x1fc   : > { %1597 = vmatpush3.msk.msra.mxu1 %vm204_vm1, %v314_v24  ;;  %v312_v25 = vpop.permute.xlu0 %311 }
 0x1fd   : > { %1598 = vmatprep.subr.msk.mxu1 %vm204_vm1, %v312_v25 }
 0x1fe   : > { %1599 = vmatpush3.msk.msra.mxu1 %vm204_vm1, %v312_v25  ;;  %v308_v26 = vpop.permute.xlu1 %307 }
 0x1ff   : > { %1600 = vmatprep.subr.mxu1 %v1787_v20 }
 0x200   : > { %1601 = vmatpush3.msra.mxu1 %v1787_v20  ;;  %v306_v27 = vpop.permute.xlu0 %305 }
 0x201   : > { %1602 = vmatprep.subr.mxu1 %v1789_v21 }
 0x202   : > { %1603 = vmatpush3.msra.mxu1 %v1789_v21  ;;  %v1447_v21 = vld [vmem:[%s2465_s2 + $0x58] sm:$0xff] }
 0x203   : > { %1604 = vmatprep.subr.msk.mxu1 %vm197_vm2, %v308_v26 }
 0x204   : > { %1605 = vmatpush3.msk.msra.mxu1 %vm197_vm2, %v308_v26 }
 0x205   : > { %1606 = vmatprep.subr.msk.mxu1 %vm197_vm2, %v306_v27 }
 0x206   : > { %1607 = vmatpush3.msk.msra.mxu1 %vm197_vm2, %v306_v27  ;;  %v1445_v27 = vld [vmem:[%s2464_s1 + $0x58] sm:$0xff] }
 0x207   : > { %1609 = vmatmul.mubr.msk.f32.vlgmr.msra.gmra.mxu1 %vm221_vm0, %v1405_v28 }
 0x208   : > { %1638 = vmatprep.mubr.msk.f32.mxu1 %vm221_vm0, %v1424_v49 }
 0x20b   : > { %v331_v29 = vpop.permute.xlu1 %330 }
 0x20d   : > { %v326_v33 = vpop.permute.xlu0 %325 }
 0x2c7   : > { %v1610_v30 = vpop.f32.mrf.mxu1 }
 0x2c8   : > { %v2127_v32 = vadd.f32 %v1610_v30, %v331_v29  ;;  %v1454_v30 = vld [vmem:[%s2464_s1 + $0x60] sm:$0xff] }
 0x2c9   : > { %v405_v34 = vpop.f32.mrf.mxu1 }
 0x2ca   : > { %v2130_v35 = vadd.f32 %v405_v34, %v326_v33  ;;  %422 = vrot.lane.b32.xlu1 %v2127_v32, %s1907_s7 }
 0x2cc   : > { %420 = vrot.lane.b32.xlu0 %v2130_v35, %s1907_s7 }
 0x2ce   : > { %416 = vrot.lane.b32.xlu1 %v2127_v32, %s1908_s8 }
 0x2d0   : > { %414 = vrot.lane.b32.xlu0 %v2130_v35, %s1908_s8 }
 0x2d2   : > { %439 = vperm.xlu1 %1785, %v1417_v36  }
 0x2d4   : > { %434 = vperm.xlu0 %1784, %v1416_v37   ;;  %v1457_v37 = vld [vmem:[%s2465_s2 + $0x68] sm:$0xff] }
 0x33c   : > { %v423_v38 = vpop.permute.xlu1 %422 }
 0x33d   : > { %1611 = vmatprep.subr.msk.mxu0 %vm204_vm1, %v423_v38 }
 0x33e   : > { %1612 = vmatpush3.msk.msra.mxu0 %vm204_vm1, %v423_v38  ;;  %v421_v39 = vpop.permute.xlu0 %420  ;;  %v1456_v38 = vld [vmem:[%s2465_s2 + $0x60] sm:$0xff] }
 0x33f   : > { %1613 = vmatprep.subr.msk.mxu0 %vm204_vm1, %v421_v39 }
 0x340   : > { %1614 = vmatpush3.msk.msra.mxu0 %vm204_vm1, %v421_v39  ;;  %v417_v40 = vpop.permute.xlu1 %416 }
 0x341   : > { %1615 = vmatprep.subr.mxu0 %v2127_v32 }
 0x342   : > { %1616 = vmatpush3.msra.mxu0 %v2127_v32  ;;  %v415_v41 = vpop.permute.xlu0 %414 }
 0x343   : > { %1617 = vmatprep.subr.mxu0 %v2130_v35 }
 0x344   : > { %1618 = vmatpush3.msra.mxu0 %v2130_v35 }
 0x345   : > { %1619 = vmatprep.subr.msk.mxu0 %vm197_vm2, %v417_v40 }
 0x346   : > { %1620 = vmatpush3.msk.msra.mxu0 %vm197_vm2, %v417_v40 }
 0x347   : > { %1621 = vmatprep.subr.msk.mxu0 %vm197_vm2, %v415_v41 }
 0x348   : > { %1622 = vmatpush3.msk.msra.mxu0 %vm197_vm2, %v415_v41 }
 0x349   : > { %1624 = vmatmul.mubr.msk.f32.vlgmr.msra.gmra.mxu0 %vm221_vm0, %v1415_v42 }
 0x34a   : > { %1653 = vmatprep.mubr.msk.f32.mxu0 %vm221_vm0, %v1434_v61 }
 0x34d   : > { %v440_v43 = vpop.permute.xlu1 %439 }
 0x34f   : > { %v435_v46 = vpop.permute.xlu0 %434 }
 0x409   : > { %v1625_v44 = vpop.f32.mrf.mxu0 }
 0x40a   : > { %v520_v45 = vadd.f32 %v1625_v44, %v440_v43  ;;  %v1455_v43 = vld [vmem:[%s2464_s1 + $0x68] sm:$0xff] }
 0x40b   : > { %v514_v47 = vpop.f32.mrf.mxu0 }
 0x40c   : > { %1790 = vtanh.f32 %v520_v45  ;;  %v515_v48 = vadd.f32 %v514_v47, %v435_v46 }
 0x40e   : > { %1792 = vtanh.f32 %v515_v48 }
 0x419   : > { %v1791_v50 = vpop.eup %1790 }
 0x41a   : > { %533 = vrot.lane.b32.xlu1 %v1791_v50, %s1907_s7 }
 0x41b   : > { %v1793_v51 = vpop.eup %1792 }
 0x41c   : > { %531 = vrot.lane.b32.xlu0 %v1793_v51, %s1907_s7 }
 0x41e   : > { %527 = vrot.lane.b32.xlu1 %v1791_v50, %s1908_s8 }
 0x420   : > { %525 = vrot.lane.b32.xlu0 %v1793_v51, %s1908_s8 }
 0x422   : > { %550 = vperm.xlu1 %1785, %v1427_v52  }
 0x424   : > { %545 = vperm.xlu0 %1784, %v1426_v53   ;;  %v1467_v53 = vld [vmem:[%s2465_s2 + $0x78] sm:$0xff] }
 0x48c   : > { %v534_v54 = vpop.permute.xlu1 %533 }
 0x48d   : > { %1626 = vmatprep.subr.msk.mxu1 %vm204_vm1, %v534_v54 }
 0x48e   : > { %1627 = vmatpush3.msk.msra.mxu1 %vm204_vm1, %v534_v54  ;;  %v532_v55 = vpop.permute.xlu0 %531  ;;  %v1466_v54 = vld [vmem:[%s2465_s2 + $0x70] sm:$0xff] }
 0x48f   : > { %1628 = vmatprep.subr.msk.mxu1 %vm204_vm1, %v532_v55 }
 0x490   : > { %1629 = vmatpush3.msk.msra.mxu1 %vm204_vm1, %v532_v55  ;;  %v528_v56 = vpop.permute.xlu1 %527 }
 0x491   : > { %1630 = vmatprep.subr.mxu1 %v1791_v50 }
 0x492   : > { %1631 = vmatpush3.msra.mxu1 %v1791_v50  ;;  %v526_v57 = vpop.permute.xlu0 %525  ;;  %v1464_v50 = vld [vmem:[%s2464_s1 + $0x70] sm:$0xff] }
 0x493   : > { %1632 = vmatprep.subr.mxu1 %v1793_v51 }
 0x494   : > { %1633 = vmatpush3.msra.mxu1 %v1793_v51 }
 0x495   : > { %1634 = vmatprep.subr.msk.mxu1 %vm197_vm2, %v528_v56 }
 0x496   : > { %1635 = vmatpush3.msk.msra.mxu1 %vm197_vm2, %v528_v56 }
 0x497   : > { %1636 = vmatprep.subr.msk.mxu1 %vm197_vm2, %v526_v57 }
 0x498   : > { %1637 = vmatpush3.msk.msra.mxu1 %vm197_vm2, %v526_v57 }
 0x499   : > { %1639 = vmatmul.mubr.msk.f32.vlgmr.msra.gmra.mxu1 %vm221_vm0, %v1425_v58 }
 0x49a   : > { %1668 = vmatprep.mubr.msk.f32.mxu1 %vm221_vm0, %v1444_v18 }
 0x49d   : > { %v551_v59 = vpop.permute.xlu1 %550 }
 0x49f   : > { %v546_v63 = vpop.permute.xlu0 %545 }
 0x559   : > { %v1640_v60 = vpop.f32.mrf.mxu1 }
 0x55a   : > { %v631_v62 = vadd.f32 %v1640_v60, %v551_v59  ;;  %v1465_v59 = vld [vmem:[%s2464_s1 + $0x78] sm:$0xff] }
 0x55b   : > { %v625_v1 = vpop.f32.mrf.mxu1 }
 0x55c   : > { %v626_v3 = vadd.f32 %v625_v1, %v546_v63  ;;  %642 = vrot.lane.b32.xlu1 %v631_v62, %s1907_s7 }
 0x55e   : > { %640 = vrot.lane.b32.xlu0 %v626_v3, %s1907_s7 }
 0x560   : > { %636 = vrot.lane.b32.xlu1 %v631_v62, %s1908_s8 }
 0x562   : > { %634 = vrot.lane.b32.xlu0 %v626_v3, %s1908_s8 }
 0x564   : > { %659 = vperm.xlu1 %1785, %v1437_v4  }
 0x566   : > { %654 = vperm.xlu0 %1784, %v1436_v5  }
 0x5ce   : > { %v643_v6 = vpop.permute.xlu1 %642 }
 0x5cf   : > { %1641 = vmatprep.subr.msk.mxu0 %vm204_vm1, %v643_v6 }
 0x5d0   : > { %1642 = vmatpush3.msk.msra.mxu0 %vm204_vm1, %v643_v6  ;;  %v641_v8 = vpop.permute.xlu0 %640 }
 0x5d1   : > { %1643 = vmatprep.subr.msk.mxu0 %vm204_vm1, %v641_v8 }
 0x5d2   : > { %1644 = vmatpush3.msk.msra.mxu0 %vm204_vm1, %v641_v8  ;;  %v637_v9 = vpop.permute.xlu1 %636  ;;  %v1477_v8 = vld [vmem:[%s2465_s2 + $0x88] sm:$0xff] }
 0x5d3   : > { %1645 = vmatprep.subr.mxu0 %v631_v62 }
 0x5d4   : > { %1646 = vmatpush3.msra.mxu0 %v631_v62  ;;  %v635_v10 = vpop.permute.xlu0 %634 }
 0x5d5   : > { %1647 = vmatprep.subr.mxu0 %v626_v3 }
 0x5d6   : > { %1648 = vmatpush3.msra.mxu0 %v626_v3  ;;  %v1474_v3 = vld [vmem:[%s2464_s1 + $0x80] sm:$0xff] }
 0x5d7   : > { %1649 = vmatprep.subr.msk.mxu0 %vm197_vm2, %v637_v9 }
 0x5d8   : > { %1650 = vmatpush3.msk.msra.mxu0 %vm197_vm2, %v637_v9 }
 0x5d9   : > { %1651 = vmatprep.subr.msk.mxu0 %vm197_vm2, %v635_v10 }
 0x5da   : > { %1652 = vmatpush3.msk.msra.mxu0 %vm197_vm2, %v635_v10 }
 0x5db   : > { %1654 = vmatmul.mubr.msk.f32.vlgmr.msra.gmra.mxu0 %vm221_vm0, %v1435_v11 }
 0x5dc   : > { %1683 = vmatprep.mubr.msk.f32.mxu0 %vm221_vm0, %v1454_v30 }
 0x5df   : > { %v660_v12 = vpop.permute.xlu1 %659 }
 0x5e1   : > { %v655_v15 = vpop.permute.xlu0 %654 }
 0x69b   : > { %v1655_v13 = vpop.f32.mrf.mxu0 }
 0x69c   : > { %v740_v14 = vadd.f32 %v1655_v13, %v660_v12  ;;  %v1475_v12 = vld [vmem:[%s2464_s1 + $0x88] sm:$0xff] }
 0x69d   : > { %v734_v16 = vpop.f32.mrf.mxu0 }
 0x69e   : > { %1794 = vtanh.f32 %v740_v14  ;;  %v735_v17 = vadd.f32 %v734_v16, %v655_v15 }
 0x6a0   : > { %1796 = vtanh.f32 %v735_v17 }
 0x6ab   : > { %v1795_v19 = vpop.eup %1794 }
 0x6ac   : > { %753 = vrot.lane.b32.xlu1 %v1795_v19, %s1907_s7 }
 0x6ad   : > { %v1797_v20 = vpop.eup %1796 }
 0x6ae   : > { %751 = vrot.lane.b32.xlu0 %v1797_v20, %s1907_s7 }
 0x6b0   : > { %747 = vrot.lane.b32.xlu1 %v1795_v19, %s1908_s8 }
 0x6b2   : > { %745 = vrot.lane.b32.xlu0 %v1797_v20, %s1908_s8 }
 0x6b4   : > { %770 = vperm.xlu1 %1785, %v1447_v21  }
 0x6b6   : > { %765 = vperm.xlu0 %1784, %v1446_v22   ;;  %v1486_v22 = vld [vmem:[%s2465_s2 + $0x90] sm:$0xff] }
 0x71e   : > { %v754_v23 = vpop.permute.xlu1 %753 }
 0x71f   : > { %1656 = vmatprep.subr.msk.mxu1 %vm204_vm1, %v754_v23 }
 0x720   : > { %1657 = vmatpush3.msk.msra.mxu1 %vm204_vm1, %v754_v23  ;;  %v752_v24 = vpop.permute.xlu0 %751  ;;  %v1487_v23 = vld [vmem:[%s2465_s2 + $0x98] sm:$0xff] }
 0x721   : > { %1658 = vmatprep.subr.msk.mxu1 %vm204_vm1, %v752_v24 }
 0x722   : > { %1659 = vmatpush3.msk.msra.mxu1 %vm204_vm1, %v752_v24  ;;  %v748_v25 = vpop.permute.xlu1 %747 }
 0x723   : > { %1660 = vmatprep.subr.mxu1 %v1795_v19 }
 0x724   : > { %1661 = vmatpush3.msra.mxu1 %v1795_v19  ;;  %v746_v26 = vpop.permute.xlu0 %745  ;;  %v1484_v19 = vld [vmem:[%s2464_s1 + $0x90] sm:$0xff] }
 0x725   : > { %1662 = vmatprep.subr.mxu1 %v1797_v20 }
 0x726   : > { %1663 = vmatpush3.msra.mxu1 %v1797_v20 }
 0x727   : > { %1664 = vmatprep.subr.msk.mxu1 %vm197_vm2, %v748_v25 }
 0x728   : > { %1665 = vmatpush3.msk.msra.mxu1 %vm197_vm2, %v748_v25 }
 0x729   : > { %1666 = vmatprep.subr.msk.mxu1 %vm197_vm2, %v746_v26 }
 0x72a   : > { %1667 = vmatpush3.msk.msra.mxu1 %vm197_vm2, %v746_v26 }
 0x72b   : > { %1669 = vmatmul.mubr.msk.f32.vlgmr.msra.gmra.mxu1 %vm221_vm0, %v1445_v27 }
 0x72c   : > { %1698 = vmatprep.mubr.msk.f32.mxu1 %vm221_vm0, %v1464_v50 }
 0x72f   : > { %v771_v28 = vpop.permute.xlu1 %770 }
 0x731   : > { %v766_v33 = vpop.permute.xlu0 %765 }
 0x7eb   : > { %v1670_v29 = vpop.f32.mrf.mxu1 }
 0x7ec   : > { %v851_v31 = vadd.f32 %v1670_v29, %v771_v28  ;;  %v1485_v28 = vld [vmem:[%s2464_s1 + $0x98] sm:$0xff] }
 0x7ed   : > { %v845_v34 = vpop.f32.mrf.mxu1 }
 0x7ee   : > { %v846_v36 = vadd.f32 %v845_v34, %v766_v33  ;;  %862 = vrot.lane.b32.xlu1 %v851_v31, %s1907_s7 }
 0x7f0   : > { %860 = vrot.lane.b32.xlu0 %v846_v36, %s1907_s7 }
 0x7f2   : > { %856 = vrot.lane.b32.xlu1 %v851_v31, %s1908_s8 }
 0x7f4   : > { %854 = vrot.lane.b32.xlu0 %v846_v36, %s1908_s8 }
 0x7f6   : > { %879 = vperm.xlu1 %1785, %v1457_v37  }
 0x7f8   : > { %874 = vperm.xlu0 %1784, %v1456_v38  }
 0x860   : > { %v863_v39 = vpop.permute.xlu1 %862 }
 0x861   : > { %1671 = vmatprep.subr.msk.mxu0 %vm204_vm1, %v863_v39 }
 0x862   : > { %1672 = vmatpush3.msk.msra.mxu0 %vm204_vm1, %v863_v39  ;;  %v861_v40 = vpop.permute.xlu0 %860 }
 0x863   : > { %1673 = vmatprep.subr.msk.mxu0 %vm204_vm1, %v861_v40 }
 0x864   : > { %1674 = vmatpush3.msk.msra.mxu0 %vm204_vm1, %v861_v40  ;;  %v857_v41 = vpop.permute.xlu1 %856 }
 0x865   : > { %1675 = vmatprep.subr.mxu0 %v851_v31 }
 0x866   : > { %1676 = vmatpush3.msra.mxu0 %v851_v31  ;;  %v855_v42 = vpop.permute.xlu0 %854 }
 0x867   : > { %1677 = vmatprep.subr.mxu0 %v846_v36 }
 0x868   : > { %1678 = vmatpush3.msra.mxu0 %v846_v36 }
 0x869   : > { %1679 = vmatprep.subr.msk.mxu0 %vm197_vm2, %v857_v41 }
 0x86a   : > { %1680 = vmatpush3.msk.msra.mxu0 %vm197_vm2, %v857_v41 }
 0x86b   : > { %1681 = vmatprep.subr.msk.mxu0 %vm197_vm2, %v855_v42 }
 0x86c   : > { %1682 = vmatpush3.msk.msra.mxu0 %vm197_vm2, %v855_v42 }
 0x86d   : > { %1684 = vmatmul.mubr.msk.f32.vlgmr.msra.gmra.mxu0 %vm221_vm0, %v1455_v43 }
 0x86e   : > { %1713 = vmatprep.mubr.msk.f32.mxu0 %vm221_vm0, %v1474_v3 }
 0x871   : > { %v880_v44 = vpop.permute.xlu1 %879 }
 0x873   : > { %v875_v47 = vpop.permute.xlu0 %874 }
 0x92d   : > { %v1685_v45 = vpop.f32.mrf.mxu0 }
 0x92e   : > { %v960_v46 = vadd.f32 %v1685_v45, %v880_v44 }
 0x92f   : > { %v954_v48 = vpop.f32.mrf.mxu0 }
 0x930   : > { %1798 = vtanh.f32 %v960_v46  ;;  %v955_v49 = vadd.f32 %v954_v48, %v875_v47 }
 0x932   : > { %1800 = vtanh.f32 %v955_v49 }
 0x93d   : > { %v1799_v51 = vpop.eup %1798 }
 0x93e   : > { %973 = vrot.lane.b32.xlu1 %v1799_v51, %s1907_s7 }
 0x93f   : > { %v1801_v52 = vpop.eup %1800 }
 0x940   : > { %971 = vrot.lane.b32.xlu0 %v1801_v52, %s1907_s7 }
 0x942   : > { %967 = vrot.lane.b32.xlu1 %v1799_v51, %s1908_s8 }
 0x944   : > { %965 = vrot.lane.b32.xlu0 %v1801_v52, %s1908_s8 }
 0x946   : > { %990 = vperm.xlu1 %1785, %v1467_v53  }
 0x948   : > { %985 = vperm.xlu0 %1784, %v1466_v54  }
 0x9b0   : > { %v974_v55 = vpop.permute.xlu1 %973 }
 0x9b1   : > { %1686 = vmatprep.subr.msk.mxu1 %vm204_vm1, %v974_v55 }
 0x9b2   : > { %1687 = vmatpush3.msk.msra.mxu1 %vm204_vm1, %v974_v55  ;;  %v972_v56 = vpop.permute.xlu0 %971 }
 0x9b3   : > { %1688 = vmatprep.subr.msk.mxu1 %vm204_vm1, %v972_v56 }
 0x9b4   : > { %1689 = vmatpush3.msk.msra.mxu1 %vm204_vm1, %v972_v56  ;;  %v968_v57 = vpop.permute.xlu1 %967 }
 0x9b5   : > { %1690 = vmatprep.subr.mxu1 %v1799_v51 }
 0x9b6   : > { %1691 = vmatpush3.msra.mxu1 %v1799_v51  ;;  %v966_v58 = vpop.permute.xlu0 %965 }
 0x9b7   : > { %1692 = vmatprep.subr.mxu1 %v1801_v52 }
 0x9b8   : > { %1693 = vmatpush3.msra.mxu1 %v1801_v52 }
 0x9b9   : > { %1694 = vmatprep.subr.msk.mxu1 %vm197_vm2, %v968_v57 }
 0x9ba   : > { %1695 = vmatpush3.msk.msra.mxu1 %vm197_vm2, %v968_v57 }
 0x9bb   : > { %1696 = vmatprep.subr.msk.mxu1 %vm197_vm2, %v966_v58 }
 0x9bc   : > { %1697 = vmatpush3.msk.msra.mxu1 %vm197_vm2, %v966_v58 }
 0x9bd   : > { %1699 = vmatmul.mubr.msk.f32.vlgmr.msra.gmra.mxu1 %vm221_vm0, %v1465_v59 }
 0x9be   : > { %1728 = vmatprep.mubr.msk.f32.mxu1 %vm221_vm0, %v1484_v19 }
 0x9c1   : > { %v991_v60 = vpop.permute.xlu1 %990 }
 0x9c3   : > { %v986_v63 = vpop.permute.xlu0 %985 }
 0xa7d   : > { %v1700_v61 = vpop.f32.mrf.mxu1 }
 0xa7e   : > { %v1071_v62 = vadd.f32 %v1700_v61, %v991_v60 }
 0xa7f   : > { %v1065_v1 = vpop.f32.mrf.mxu1 }
 0xa80   : > { %v1075_v4 = vadd.f32 %v1071_v62, %v2127_v32  ;;  %v1066_v5 = vadd.f32 %v1065_v1, %v986_v63  ;;  %v1476_v32 = vld [vmem:[%s2465_s2 + $0x80] sm:$0xff] }
 0xa82   : > { %v1074_v6 = vadd.f32 %v1066_v5, %v2130_v35  ;;  %1084 = vrot.lane.b32.xlu1 %v1075_v4, %s1907_s7 }
 0xa84   : > { %1082 = vrot.lane.b32.xlu0 %v1074_v6, %s1907_s7 }
 0xa86   : > { %1078 = vrot.lane.b32.xlu1 %v1075_v4, %s1908_s8 }
 0xa88   : > { %1076 = vrot.lane.b32.xlu0 %v1074_v6, %s1908_s8 }
 0xa8a   : > { %1101 = vperm.xlu1 %1785, %v1477_v8  }
 0xa8c   : > { %1096 = vperm.xlu0 %1784, %v1476_v32  }
 0xaf4   : > { %v1085_v9 = vpop.permute.xlu1 %1084 }
 0xaf5   : > { %1701 = vmatprep.subr.msk.mxu0 %vm204_vm1, %v1085_v9 }
 0xaf6   : > { %1702 = vmatpush3.msk.msra.mxu0 %vm204_vm1, %v1085_v9  ;;  %v1083_v35 = vpop.permute.xlu0 %1082 }
 0xaf7   : > { %1703 = vmatprep.subr.msk.mxu0 %vm204_vm1, %v1083_v35 }
 0xaf8   : > { %1704 = vmatpush3.msk.msra.mxu0 %vm204_vm1, %v1083_v35  ;;  %v1079_v10 = vpop.permute.xlu1 %1078 }
 0xaf9   : > { %1705 = vmatprep.subr.mxu0 %v1075_v4 }
 0xafa   : > { %1706 = vmatpush3.msra.mxu0 %v1075_v4  ;;  %v1077_v11 = vpop.permute.xlu0 %1076 }
 0xafb   : > { %1707 = vmatprep.subr.mxu0 %v1074_v6 }
 0xafc   : > { %1708 = vmatpush3.msra.mxu0 %v1074_v6 }
 0xafd   : > { %1709 = vmatprep.subr.msk.mxu0 %vm197_vm2, %v1079_v10 }
 0xafe   : > { %1710 = vmatpush3.msk.msra.mxu0 %vm197_vm2, %v1079_v10 }
 0xaff   : > { %1711 = vmatprep.subr.msk.mxu0 %vm197_vm2, %v1077_v11 }
 0xb00   : > { %1712 = vmatpush3.msk.msra.mxu0 %vm197_vm2, %v1077_v11 }
 0xb01   : > { %1714 = vmatmul.mubr.msk.f32.vlgmr.msra.gmra.mxu0 %vm221_vm0, %v1475_v12 }
 0xb05   : > { %v1102_v13 = vpop.permute.xlu1 %1101 }
 0xb07   : > { %v1097_v16 = vpop.permute.xlu0 %1096 }
 0xbc1   : > { %v1715_v14 = vpop.f32.mrf.mxu0 }
 0xbc2   : > { %v1182_v15 = vadd.f32 %v1715_v14, %v1102_v13 }
 0xbc3   : > { %v1176_v17 = vpop.f32.mrf.mxu0 }
 0xbc4   : > { %1802 = vtanh.f32 %v1182_v15  ;;  %v1177_v18 = vadd.f32 %v1176_v17, %v1097_v16 }
 0xbc6   : > { %1804 = vtanh.f32 %v1177_v18 }
 0xbd1   : > { %v1803_v20 = vpop.eup %1802 }
 0xbd2   : > { %1195 = vrot.lane.b32.xlu1 %v1803_v20, %s1907_s7 }
 0xbd3   : > { %v1805_v21 = vpop.eup %1804 }
 0xbd4   : > { %1193 = vrot.lane.b32.xlu0 %v1805_v21, %s1907_s7 }
 0xbd6   : > { %1189 = vrot.lane.b32.xlu1 %v1803_v20, %s1908_s8 }
 0xbd8   : > { %1187 = vrot.lane.b32.xlu0 %v1805_v21, %s1908_s8 }
 0xbda   : > { %1207 = vperm.xlu1 %1785, %v1486_v22  }
 0xbdc   : > { %1212 = vperm.xlu0 %1784, %v1487_v23  }
 0xc44   : > { %v1196_v24 = vpop.permute.xlu1 %1195 }
 0xc45   : > { %1716 = vmatprep.subr.msk.mxu1 %vm204_vm1, %v1196_v24 }
 0xc46   : > { %1717 = vmatpush3.msk.msra.mxu1 %vm204_vm1, %v1196_v24  ;;  %v1194_v25 = vpop.permute.xlu0 %1193 }
 0xc47   : > { %1718 = vmatprep.subr.msk.mxu1 %vm204_vm1, %v1194_v25 }
 0xc48   : > { %1719 = vmatpush3.msk.msra.mxu1 %vm204_vm1, %v1194_v25  ;;  %v1190_v26 = vpop.permute.xlu1 %1189 }
 0xc49   : > { %1720 = vmatprep.subr.mxu1 %v1803_v20 }
 0xc4a   : > { %1721 = vmatpush3.msra.mxu1 %v1803_v20  ;;  %v1188_v27 = vpop.permute.xlu0 %1187 }
 0xc4b   : > { %1722 = vmatprep.subr.mxu1 %v1805_v21 }
 0xc4c   : > { %1723 = vmatpush3.msra.mxu1 %v1805_v21 }
 0xc4d   : > { %1724 = vmatprep.subr.msk.mxu1 %vm197_vm2, %v1190_v26 }
 0xc4e   : > { %1725 = vmatpush3.msk.msra.mxu1 %vm197_vm2, %v1190_v26 }
 0xc4f   : > { %1726 = vmatprep.subr.msk.mxu1 %vm197_vm2, %v1188_v27 }
 0xc50   : > { %1727 = vmatpush3.msk.msra.mxu1 %vm197_vm2, %v1188_v27 }
 0xc51   : > { %1729 = vmatmul.mubr.msk.f32.vlgmr.msra.gmra.mxu1 %vm221_vm0, %v1485_v28 }
 0xc55   : > { %v1208_v33 = vpop.permute.xlu1 %1207 }
 0xc57   : > { %v1213_v29 = vpop.permute.xlu0 %1212 }
 0xd11   : > { %v1730_v30 = vpop.f32.mrf.mxu1 }
 0xd12   : > { %v1293_v31 = vadd.f32 %v1730_v30, %v1213_v29 }
 0xd13   : > { %v1287_v34 = vpop.f32.mrf.mxu1 }
 0xd14   : > { %v1297_v36 = vmul.f32 %v1293_v31, %v2040_v0  ;;  %v1288_v37 = vadd.f32 %v1287_v34, %v1208_v33 }
 0xd16   : > { %1806 = vtanh.f32 %v1297_v36  ;;  %v1296_v38 = vmul.f32 %v1288_v37, %v2049_v2 }
 0xd18   : > { %1808 = vtanh.f32 %v1296_v38 }
 0xd23   : > { %v1807_v7 = vpop.eup %1806 }
 0xd24   : > { %1301 = vst [vmem:[%s188_s28 + $0x8] sm:$0xff] %v1807_v7 }
 0xd25   : > { %v1809_v0 = vpop.eup %1808 }
 0xd26   : > { %1300 = vst [vmem:[%s188_s28] sm:$0xff] %v1809_v0 }
 0xd27   : > { %1851 = shalt.err (!%p1848_p10)
}
 0xd28   : > { %s1852_s17 = scalar_lea.hbm %s2418_s11, 256  ;;  %s1856_s22 = scalar_lea.hbm %s2466_s3, 512 }
 0xd29   : > { %p1853_p0 = scmp.ne.s32.totalorder %s2418_s11, %s1852_s17  ;;  %p1857_p1 = scmp.lt.s32.totalorder %s2418_s11, %s2466_s3 }
 0xd2a   : > { %p1858_p3 = scmp.lt.s32.totalorder %s1856_s22, %s1852_s17 }
 0xd2b   : > { %p1854_p2 = pnand %p1853_p0, %p2475_p12 }
 0xd2c   : > { %p1859_p6 = por %p1858_p3, %p1857_p1 }
 0xd2d   : > { %p1855_p9 = pneg %p1854_p2 }
 0xd2f   : > { %p1860_p11 = pnand %p1859_p6, %p1855_p9 }
 0xd31   : > { %1863 = shalt.err (!%p1860_p11)
}
 0xd32   : > { %s1911_s8 = smov 128   ;;  %s1912_s27 = smov 8  }
 0xd33   : > { %1733 = dma.vmem_to_hbm [thread:$0]  (%p2475_p12), %s2420_s29, 256, %s2418_s11, %s1303_s4, %s1911_s8, %s1911_s8, %s1912_s27  }
 0xd34 PF: > { %s1331_s28 = sand.u32 1, %s1890_s12   ;;  %p2476_p13 = scmp.ne.s32.totalorder %s2472_s25, 0 }
 0xd35   : > { %p2477_p4 = scmp.ge.s32.totalorder %s1902_s15, 2  ;;  %s1332_s30 = scalar_lea.sflag [#allocation4], %s1331_s28 }
 0xd37   : > { %p1740_p5 = pnand %p2477_p4, %p2476_p13 }
 0xd39   : > { %p1741_p7 = pneg %p1740_p5 }
 0xd3b   : > { %1885 = dma.done.wait (%p1741_p7), %s1332_s30, 256  }
 0xd3c   : > { %1887 = vsyncadd (%p1741_p7), %s1332_s30, 4294967040  ;;  %p16_p8 = scmp.ge.s32.totalorder %s1958_s18, 4   ;;  %s2478_s12 = smov %s1894_s13 }
 0xd3d   : > { %s2479_s13 = smov %s1898_s14  ;;  %s2480_s14 = smov %s1970_s21 }
 0xd3e   : > { %s2481_s15 = smov %s1958_s18  ;;  %18 = sbr.rel (!%p16_p8) target bundleno = 5 (0x5), region = 95 }
 0xd43   :  { %1337 = vsyncpa [#allocation3], 1 }
 0xd44   :  { %1339 = vsyncpa [#allocation3 + $0x1], 1 }
 0xd45   :  { %1340 = vsyncpa [#allocation4], 1 }
 0xd46   :  { %1342 = vsyncpa [#allocation4 + $0x1], 1 }

</bundles_post_ra>
